<compile_context>
chip_gen: v6e
topology: v6e:2x2x1
jax: 0.10.0
libtpu: 0.0.40
codegen_flags: <defaults>
</compile_context>

<pallas_src>
import jax
import jax.numpy as jnp
from jax.experimental import pallas as pl
from jax.experimental.pallas import tpu as pltpu

_LANE = 128
_SUBLANE = 8


def _round_up(n, m):
    return ((n + m - 1) // m) * m


def _cdiv(a, b):
    return -(-a // b)


# ----------------------------------------------------------------------------
# Fused kernel: all layers of the MLP for one row tile.
# ----------------------------------------------------------------------------
def _make_fused_mlp_kernel(n_hidden):
    """Kernel for `n_hidden` MaskedLinear+sigmoid layers + final Linear.

    Ref order: (x_ref, mask_ref, w0, b0, w1, b1, ..., wL, bL, o_ref)
    """

    def kernel(*refs):
        x_ref, m_ref = refs[0], refs[1]
        wb_refs = refs[2:-1]
        o_ref = refs[-1]

        h = x_ref[...]                           # (tm, Fp) bf16
        # keep-gate: 1.0 valid / 0.0 padded, folded with the 0.5 of the
        # tanh-form sigmoid; computed once, reused by every hidden layer.
        half_keep = 0.5 * (1.0 - m_ref[...])     # (tm, 1) f32

        for layer in range(n_hidden):
            w = wb_refs[2 * layer][...]          # (Fin_p, H_p) bf16, VMEM-resident
            b = wb_refs[2 * layer + 1][...]      # (1, H_p) f32
            y = jnp.dot(h, w, preferred_element_type=jnp.float32) + b
            # sigmoid(masked_fill(y, mask, -inf)) == sigmoid(y) * keep
            #                                     == 0.5*keep * (tanh(0.5*y)+1)
            # (single EUP op per element instead of exp + reciprocal)
            h = (half_keep * (jnp.tanh(0.5 * y) + 1.0)).astype(h.dtype)

        # Final (unmasked) Linear.
        w = wb_refs[2 * n_hidden][...]
        b = wb_refs[2 * n_hidden + 1][...]
        y = jnp.dot(h, w, preferred_element_type=jnp.float32) + b
        o_ref[...] = y.astype(o_ref.dtype)

    return kernel


# ----------------------------------------------------------------------------
# One-time parameter preparation (hoisted out of the forward pass).
# ----------------------------------------------------------------------------
def prepare_params(params, *, compute_dtype=jnp.bfloat16):
    """Zero-pad every weight/bias to multiple-of-128 feature widths and cast
    weights to the MXU compute dtype.  Call ONCE (outside the per-step graph).

    Returns (padded_params, in_features, out_features)."""
    padded = []
    for (w, b) in params:
        fin, fout = w.shape
        fin_p, fout_p = _round_up(fin, _LANE), _round_up(fout, _LANE)
        wp = jnp.pad(w.astype(jnp.float32),
                     ((0, fin_p - fin), (0, fout_p - fout))).astype(compute_dtype)
        bp = jnp.pad(b.astype(jnp.float32).reshape(1, -1),
                     ((0, 0), (0, fout_p - fout)))         # bias stays f32
        padded.append((wp, bp))
    return padded, params[0][0].shape[0], params[-1][0].shape[1]


# ----------------------------------------------------------------------------
# Forward wrapper: one fused pallas_call per row tile.
# ----------------------------------------------------------------------------
def tiles_mlp_forward(x, mask, prepared, *, tm_target=512):
    """
    x:        (B, N_TILES, IN_FEATURES) float32
    mask:     (B, N_TILES) bool, True for padded tiles (or None)
    prepared: output of prepare_params(params)
    returns   (B, N_TILES, OUT_FEATURES) in x.dtype
    """
    padded_params, in_features, out_features = prepared
    B, N, F = x.shape
    assert F == in_features, (F, in_features)
    R = B * N

    compute_dtype = padded_params[0][0].dtype
    Fp = padded_params[0][0].shape[0]
    OUTp = padded_params[-1][0].shape[1]
    n_hidden = len(padded_params) - 1
    out_dtype = x.dtype

    # Row tiling: >=2 grid steps (keeps v7x's second TensorCore busy under
    # dimension_semantics=("parallel",)), tm a multiple of 8 (sublanes), and
    # waste-aware (Rp - R < ~8 rows per step instead of up to tm-1).
    n_steps = max(2, _cdiv(R, tm_target))
    tm = max(_SUBLANE, _round_up(_cdiv(R, n_steps), _SUBLANE))
    Rp = n_steps * tm

    # Lane-dense, bf16 activations (halves x-tile DMA vs f32).
    h = x.reshape(R, F).astype(compute_dtype)
    h = jnp.pad(h, ((0, Rp - R), (0, Fp - F)))

    if mask is None:
        m2d = jnp.zeros((Rp, 1), jnp.float32)
    else:
        m2d = jnp.pad(mask.reshape(R, 1).astype(jnp.float32),
                      ((0, Rp - R), (0, 0)))

    def run(single_buffer_weights):
        wbuf = 1 if single_buffer_weights else 2

        in_specs = [
            pl.BlockSpec((tm, Fp), lambda i: (i, 0)),   # x row tile (lane-dense)
            pl.BlockSpec((tm, 1), lambda i: (i, 0)),    # mask row tile
        ]
        args = [h, m2d]
        for (wp, bp) in padded_params:
            if single_buffer_weights:
                # Grid-invariant weights: single buffer (no re-DMA happens
                # anyway) -> halves resident weight VMEM.
                in_specs.append(pl.BlockSpec(wp.shape, lambda i: (0, 0),
                                             pipeline_mode=pl.Buffered(1)))
                in_specs.append(pl.BlockSpec(bp.shape, lambda i: (0, 0),
                                             pipeline_mode=pl.Buffered(1)))
            else:
                in_specs.append(pl.BlockSpec(wp.shape, lambda i: (0, 0)))
                in_specs.append(pl.BlockSpec(bp.shape, lambda i: (0, 0)))
            args.append(wp)
            args.append(bp)

        # Explicit VMEM budget: pipelined x/mask/out tiles + resident weights
        # + activation-temporary headroom.  Floor = 32 MiB default, cap 128 MiB.
        max_w = max([Fp] + [wp.shape[1] for (wp, _) in padded_params])
        vmem = 2 * tm * Fp * jnp.dtype(compute_dtype).itemsize      # x (2 bufs)
        vmem += 2 * tm * _LANE * 4                                  # mask (lane-padded)
        vmem += 2 * tm * OUTp * jnp.dtype(out_dtype).itemsize       # out (2 bufs)
        for (wp, bp) in padded_params:
            vmem += wbuf * wp.shape[0] * wp.shape[1] * jnp.dtype(compute_dtype).itemsize
            vmem += wbuf * _SUBLANE * bp.shape[1] * 4               # bias (sublane-padded)
        vmem += 4 * tm * max_w * 4                                  # activation temporaries
        vmem_limit = int(min(max(vmem + (8 << 20), 32 << 20), 128 << 20))

        return pl.pallas_call(
            _make_fused_mlp_kernel(n_hidden),
            out_shape=jax.ShapeDtypeStruct((Rp, OUTp), out_dtype),
            grid_spec=pltpu.PrefetchScalarGridSpec(
                num_scalar_prefetch=0,
                grid=(n_steps,),
                in_specs=in_specs,
                out_specs=pl.BlockSpec((tm, OUTp), lambda i: (i, 0)),  # lane-dense store
            ),
            compiler_params=pltpu.CompilerParams(
                dimension_semantics=("parallel",),   # megacore sharding on v7x
                vmem_limit_bytes=vmem_limit,
            ),
        )(*args)

    # TODO(synk): if total resident weight bytes exceed ~48 MiB (v7x has only
    # 64 MiB VMEM), fall back to tiling the largest layer over an extra grid
    # axis instead of keeping every layer resident.
    try:
        out = run(single_buffer_weights=True)
    except Exception:
        # Fallback for jax versions that reject Buffered(1) on top-level
        # BlockSpecs: default double-buffering (correct, just 2x weight VMEM).
        out = run(single_buffer_weights=False)

    return out[:R, :out_features].reshape(B, N, out_features)


# ----------------------------------------------------------------------------
# Deterministic parameter init (PyTorch nn.Linear-style uniform bounds)
# ----------------------------------------------------------------------------
def init_params(key, in_features, out_features, hidden):
    sizes = []
    f = in_features
    if hidden is not None:
        for hdim in hidden:
            sizes.append((f, hdim))
            f = hdim
    sizes.append((f, out_features))

    params = []
    for (fin, fout) in sizes:
        key, kw, kb = jax.random.split(key, 3)
        bound = 1.0 / (fin ** 0.5)
        w = jax.random.uniform(kw, (fin, fout), jnp.float32, -bound, bound)
        b = jax.random.uniform(kb, (fout,), jnp.float32, -bound, bound)
        params.append((w, b))
    return params


# ----------------------------------------------------------------------------
# Reference (pure JAX, f32) for sanity check
# ----------------------------------------------------------------------------
def tiles_mlp_ref(x, mask, params):
    h = x
    for (w, b) in params[:-1]:
        h = h @ w + b
        if mask is not None:
            h = jnp.where(mask[..., None], -jnp.inf, h)
        h = jax.nn.sigmoid(h)
    w, b = params[-1]
    return h @ w + b


if __name__ == "__main__":
    B, N_TILES, IN_FEATURES = 2, 8, 32
    HIDDEN = [16]
    OUT_FEATURES = 1

    key = jax.random.PRNGKey(0)
    kx, km, kp = jax.random.split(key, 3)

    x = jax.random.normal(kx, (B, N_TILES, IN_FEATURES), jnp.float32)
    # mark the last 3 tiles of each bag as padded
    mask = jnp.arange(N_TILES)[None, :] >= (N_TILES - 3)
    mask = jnp.broadcast_to(mask, (B, N_TILES))

    params = init_params(kp, IN_FEATURES, OUT_FEATURES, HIDDEN)
    prepared = prepare_params(params)   # pad + bf16-cast ONCE, outside the forward

    out = jax.block_until_ready(tiles_mlp_forward(x, mask, prepared))
    ref = tiles_mlp_ref(x, mask, params)
    assert out.shape == (B, N_TILES, OUT_FEATURES), out.shape
    # bf16 MXU inputs (f32 accumulation) -> loosened tolerance vs f32 reference
    assert jnp.allclose(out, ref, atol=5e-2, rtol=5e-2), (
        float(jnp.max(jnp.abs(out - ref))))

    # also check the mask=None path (plain MLP)
    out_nm = jax.block_until_ready(tiles_mlp_forward(x, None, prepared))
    ref_nm = tiles_mlp_ref(x, None, params)
    assert jnp.allclose(out_nm, ref_nm, atol=5e-2, rtol=5e-2), (
        float(jnp.max(jnp.abs(out_nm - ref_nm))))

    print("KERNEL_OK")
</pallas_src>

<mosaic_0001>
module attributes {stable_mosaic.version = 11 : i64} {
  func.func @kernel(%arg0: i32, %arg1: memref<8x128xbf16, #tpu.memory_space<vmem>>, %arg2: memref<8x1xf32, #tpu.memory_space<vmem>>, %arg3: memref<128x128xbf16, #tpu.memory_space<vmem>>, %arg4: memref<1x128xf32, #tpu.memory_space<vmem>>, %arg5: memref<128x128xbf16, #tpu.memory_space<vmem>>, %arg6: memref<1x128xf32, #tpu.memory_space<vmem>>, %arg7: memref<8x128xf32, #tpu.memory_space<vmem>>) attributes {dimension_semantics = [#tpu.dimension_semantics<parallel>], iteration_bounds = array<i64: 2>, scalar_prefetch = 0 : i64, scratch_operands = 0 : i64, tpu.core_type = #tpu.core_type<tc>, window_params = [{transform_indices = @transform_0, window_bounds = array<i64: 8, 128>}, {transform_indices = @transform_1, window_bounds = array<i64: 8, 1>}, {pipeline_mode = #tpu.pipeline_mode<synchronous>, transform_indices = @transform_2, window_bounds = array<i64: 128, 128>}, {pipeline_mode = #tpu.pipeline_mode<synchronous>, transform_indices = @transform_3, window_bounds = array<i64: 1, 128>}, {pipeline_mode = #tpu.pipeline_mode<synchronous>, transform_indices = @transform_4, window_bounds = array<i64: 128, 128>}, {pipeline_mode = #tpu.pipeline_mode<synchronous>, transform_indices = @transform_5, window_bounds = array<i64: 1, 128>}, {transform_indices = @transform_6, window_bounds = array<i64: 8, 128>}]} {
    %c0 = arith.constant 0 : index
    %c0_0 = arith.constant 0 : index
    %0 = vector.load %arg1[%c0, %c0_0] : memref<8x128xbf16, #tpu.memory_space<vmem>>, vector<8x128xbf16>
    %c0_1 = arith.constant 0 : index
    %c0_2 = arith.constant 0 : index
    %1 = vector.load %arg2[%c0_1, %c0_2] : memref<8x1xf32, #tpu.memory_space<vmem>>, vector<8x1xf32>
    %cst = arith.constant 1.000000e+00 : f32
    %2 = vector.broadcast %cst : f32 to vector<8x1xf32>
    %3 = arith.subf %2, %1 : vector<8x1xf32>
    %cst_3 = arith.constant 5.000000e-01 : f32
    %4 = vector.broadcast %cst_3 : f32 to vector<8x1xf32>
    %5 = arith.mulf %4, %3 : vector<8x1xf32>
    %c0_4 = arith.constant 0 : index
    %c0_5 = arith.constant 0 : index
    %6 = vector.load %arg3[%c0_4, %c0_5] : memref<128x128xbf16, #tpu.memory_space<vmem>>, vector<128x128xbf16>
    %c0_6 = arith.constant 0 : index
    %c0_7 = arith.constant 0 : index
    %7 = vector.load %arg4[%c0_6, %c0_7] : memref<1x128xf32, #tpu.memory_space<vmem>>, vector<1x128xf32>
    %cst_8 = arith.constant dense<0.000000e+00> : vector<8x128xf32>
    %8 = tpu.matmul %0, %6, %cst_8 {dimension_numbers = #tpu.dot_dimension_numbers<[1], [0], [0], [1], [0, 0, 1, 1], [], []>} : vector<8x128xbf16>, vector<128x128xbf16>, vector<8x128xf32> -> vector<8x128xf32>
    %9 = vector.broadcast %7 : vector<1x128xf32> to vector<8x128xf32>
    %10 = arith.addf %8, %9 : vector<8x128xf32>
    %cst_9 = arith.constant 5.000000e-01 : f32
    %11 = vector.broadcast %cst_9 : f32 to vector<8x128xf32>
    %12 = arith.mulf %11, %10 : vector<8x128xf32>
    %13 = math.tanh %12 : vector<8x128xf32>
    %cst_10 = arith.constant 1.000000e+00 : f32
    %14 = vector.broadcast %cst_10 : f32 to vector<8x128xf32>
    %15 = arith.addf %13, %14 : vector<8x128xf32>
    %16 = vector.broadcast %5 : vector<8x1xf32> to vector<8x128xf32>
    %17 = arith.mulf %16, %15 : vector<8x128xf32>
    %18 = arith.truncf %17 : vector<8x128xf32> to vector<8x128xbf16>
    %c0_11 = arith.constant 0 : index
    %c0_12 = arith.constant 0 : index
    %19 = vector.load %arg5[%c0_11, %c0_12] : memref<128x128xbf16, #tpu.memory_space<vmem>>, vector<128x128xbf16>
    %c0_13 = arith.constant 0 : index
    %c0_14 = arith.constant 0 : index
    %20 = vector.load %arg6[%c0_13, %c0_14] : memref<1x128xf32, #tpu.memory_space<vmem>>, vector<1x128xf32>
    %cst_15 = arith.constant dense<0.000000e+00> : vector<8x128xf32>
    %21 = tpu.matmul %18, %19, %cst_15 {dimension_numbers = #tpu.dot_dimension_numbers<[1], [0], [0], [1], [0, 0, 1, 1], [], []>} : vector<8x128xbf16>, vector<128x128xbf16>, vector<8x128xf32> -> vector<8x128xf32>
    %22 = vector.broadcast %20 : vector<1x128xf32> to vector<8x128xf32>
    %23 = arith.addf %21, %22 : vector<8x128xf32>
    %c0_16 = arith.constant 0 : index
    %c0_17 = arith.constant 0 : index
    %24 = vector.load %arg7[%c0_16, %c0_17] : memref<8x128xf32, #tpu.memory_space<vmem>>, vector<8x128xf32>
    tpu.vector_store %arg7[%c0_16, %c0_17], %23 {strides = array<i32>} : memref<8x128xf32, #tpu.memory_space<vmem>>, vector<8x128xf32>,
    return
  }
  func.func @transform_0(%arg0: i32) -> (i32, i32) {
    %c0_i32 = arith.constant 0 : i32
    %c0_i32_0 = arith.constant 0 : i32
    return %arg0, %c0_i32 : i32, i32
  }
  func.func @transform_1(%arg0: i32) -> (i32, i32) {
    %c0_i32 = arith.constant 0 : i32
    %c0_i32_0 = arith.constant 0 : i32
    return %arg0, %c0_i32 : i32, i32
  }
  func.func @transform_2(%arg0: i32) -> (i32, i32) {
    %c0_i32 = arith.constant 0 : i32
    %c0_i32_0 = arith.constant 0 : i32
    %c0_i32_1 = arith.constant 0 : i32
    return %c0_i32, %c0_i32_0 : i32, i32
  }
  func.func @transform_3(%arg0: i32) -> (i32, i32) {
    %c0_i32 = arith.constant 0 : i32
    %c0_i32_0 = arith.constant 0 : i32
    %c0_i32_1 = arith.constant 0 : i32
    return %c0_i32, %c0_i32_0 : i32, i32
  }
  func.func @transform_4(%arg0: i32) -> (i32, i32) {
    %c0_i32 = arith.constant 0 : i32
    %c0_i32_0 = arith.constant 0 : i32
    %c0_i32_1 = arith.constant 0 : i32
    return %c0_i32, %c0_i32_0 : i32, i32
  }
  func.func @transform_5(%arg0: i32) -> (i32, i32) {
    %c0_i32 = arith.constant 0 : i32
    %c0_i32_0 = arith.constant 0 : i32
    %c0_i32_1 = arith.constant 0 : i32
    return %c0_i32, %c0_i32_0 : i32, i32
  }
  func.func @transform_6(%arg0: i32) -> (i32, i32) {
    %c0_i32 = arith.constant 0 : i32
    %c0_i32_0 = arith.constant 0 : i32
    return %arg0, %c0_i32 : i32, i32
  }
}

module attributes {stable_mosaic.version = 11 : i64} {
  func.func @kernel(%arg0: i32, %arg1: memref<8x128xbf16, #tpu.memory_space<vmem>>, %arg2: memref<8x1xf32, #tpu.memory_space<vmem>>, %arg3: memref<128x128xbf16, #tpu.memory_space<vmem>>, %arg4: memref<1x128xf32, #tpu.memory_space<vmem>>, %arg5: memref<128x128xbf16, #tpu.memory_space<vmem>>, %arg6: memref<1x128xf32, #tpu.memory_space<vmem>>, %arg7: memref<8x128xf32, #tpu.memory_space<vmem>>) attributes {dimension_semantics = [#tpu.dimension_semantics<parallel>], iteration_bounds = array<i64: 2>, scalar_prefetch = 0 : i64, scratch_operands = 0 : i64, tpu.core_type = #tpu.core_type<tc>, window_params = [{transform_indices = @transform_0, window_bounds = array<i64: 8, 128>}, {transform_indices = @transform_1, window_bounds = array<i64: 8, 1>}, {pipeline_mode = #tpu.pipeline_mode<synchronous>, transform_indices = @transform_2, window_bounds = array<i64: 128, 128>}, {pipeline_mode = #tpu.pipeline_mode<synchronous>, transform_indices = @transform_3, window_bounds = array<i64: 1, 128>}, {pipeline_mode = #tpu.pipeline_mode<synchronous>, transform_indices = @transform_4, window_bounds = array<i64: 128, 128>}, {pipeline_mode = #tpu.pipeline_mode<synchronous>, transform_indices = @transform_5, window_bounds = array<i64: 1, 128>}, {transform_indices = @transform_6, window_bounds = array<i64: 8, 128>}]} {
    %c0 = arith.constant 0 : index
    %c0_0 = arith.constant 0 : index
    %0 = vector.load %arg1[%c0, %c0_0] : memref<8x128xbf16, #tpu.memory_space<vmem>>, vector<8x128xbf16>
    %c0_1 = arith.constant 0 : index
    %c0_2 = arith.constant 0 : index
    %1 = vector.load %arg2[%c0_1, %c0_2] : memref<8x1xf32, #tpu.memory_space<vmem>>, vector<8x1xf32>
    %cst = arith.constant 1.000000e+00 : f32
    %2 = vector.broadcast %cst : f32 to vector<8x1xf32>
    %3 = arith.subf %2, %1 : vector<8x1xf32>
    %cst_3 = arith.constant 5.000000e-01 : f32
    %4 = vector.broadcast %cst_3 : f32 to vector<8x1xf32>
    %5 = arith.mulf %4, %3 : vector<8x1xf32>
    %c0_4 = arith.constant 0 : index
    %c0_5 = arith.constant 0 : index
    %6 = vector.load %arg3[%c0_4, %c0_5] : memref<128x128xbf16, #tpu.memory_space<vmem>>, vector<128x128xbf16>
    %c0_6 = arith.constant 0 : index
    %c0_7 = arith.constant 0 : index
    %7 = vector.load %arg4[%c0_6, %c0_7] : memref<1x128xf32, #tpu.memory_space<vmem>>, vector<1x128xf32>
    %cst_8 = arith.constant dense<0.000000e+00> : vector<8x128xf32>
    %8 = tpu.matmul %0, %6, %cst_8 {dimension_numbers = #tpu.dot_dimension_numbers<[1], [0], [0], [1], [0, 0, 1, 1], [], []>} : vector<8x128xbf16>, vector<128x128xbf16>, vector<8x128xf32> -> vector<8x128xf32>
    %9 = vector.broadcast %7 : vector<1x128xf32> to vector<8x128xf32>
    %10 = arith.addf %8, %9 : vector<8x128xf32>
    %cst_9 = arith.constant 5.000000e-01 : f32
    %11 = vector.broadcast %cst_9 : f32 to vector<8x128xf32>
    %12 = arith.mulf %11, %10 : vector<8x128xf32>
    %13 = math.tanh %12 : vector<8x128xf32>
    %cst_10 = arith.constant 1.000000e+00 : f32
    %14 = vector.broadcast %cst_10 : f32 to vector<8x128xf32>
    %15 = arith.addf %13, %14 : vector<8x128xf32>
    %16 = vector.broadcast %5 : vector<8x1xf32> to vector<8x128xf32>
    %17 = arith.mulf %16, %15 : vector<8x128xf32>
    %18 = arith.truncf %17 : vector<8x128xf32> to vector<8x128xbf16>
    %c0_11 = arith.constant 0 : index
    %c0_12 = arith.constant 0 : index
    %19 = vector.load %arg5[%c0_11, %c0_12] : memref<128x128xbf16, #tpu.memory_space<vmem>>, vector<128x128xbf16>
    %c0_13 = arith.constant 0 : index
    %c0_14 = arith.constant 0 : index
    %20 = vector.load %arg6[%c0_13, %c0_14] : memref<1x128xf32, #tpu.memory_space<vmem>>, vector<1x128xf32>
    %cst_15 = arith.constant dense<0.000000e+00> : vector<8x128xf32>
    %21 = tpu.matmul %18, %19, %cst_15 {dimension_numbers = #tpu.dot_dimension_numbers<[1], [0], [0], [1], [0, 0, 1, 1], [], []>} : vector<8x128xbf16>, vector<128x128xbf16>, vector<8x128xf32> -> vector<8x128xf32>
    %22 = vector.broadcast %20 : vector<1x128xf32> to vector<8x128xf32>
    %23 = arith.addf %21, %22 : vector<8x128xf32>
    %c0_16 = arith.constant 0 : index
    %c0_17 = arith.constant 0 : index
    %24 = vector.load %arg7[%c0_16, %c0_17] : memref<8x128xf32, #tpu.memory_space<vmem>>, vector<8x128xf32>
    tpu.vector_store %arg7[%c0_16, %c0_17], %23 {strides = array<i32>} : memref<8x128xf32, #tpu.memory_space<vmem>>, vector<8x128xf32>,
    return
  }
  func.func @transform_0(%arg0: i32) -> (i32, i32) {
    %c0_i32 = arith.constant 0 : i32
    %c0_i32_0 = arith.constant 0 : i32
    return %arg0, %c0_i32 : i32, i32
  }
  func.func @transform_1(%arg0: i32) -> (i32, i32) {
    %c0_i32 = arith.constant 0 : i32
    %c0_i32_0 = arith.constant 0 : i32
    return %arg0, %c0_i32 : i32, i32
  }
  func.func @transform_2(%arg0: i32) -> (i32, i32) {
    %c0_i32 = arith.constant 0 : i32
    %c0_i32_0 = arith.constant 0 : i32
    %c0_i32_1 = arith.constant 0 : i32
    return %c0_i32, %c0_i32_0 : i32, i32
  }
  func.func @transform_3(%arg0: i32) -> (i32, i32) {
    %c0_i32 = arith.constant 0 : i32
    %c0_i32_0 = arith.constant 0 : i32
    %c0_i32_1 = arith.constant 0 : i32
    return %c0_i32, %c0_i32_0 : i32, i32
  }
  func.func @transform_4(%arg0: i32) -> (i32, i32) {
    %c0_i32 = arith.constant 0 : i32
    %c0_i32_0 = arith.constant 0 : i32
    %c0_i32_1 = arith.constant 0 : i32
    return %c0_i32, %c0_i32_0 : i32, i32
  }
  func.func @transform_5(%arg0: i32) -> (i32, i32) {
    %c0_i32 = arith.constant 0 : i32
    %c0_i32_0 = arith.constant 0 : i32
    %c0_i32_1 = arith.constant 0 : i32
    return %c0_i32, %c0_i32_0 : i32, i32
  }
  func.func @transform_6(%arg0: i32) -> (i32, i32) {
    %c0_i32 = arith.constant 0 : i32
    %c0_i32_0 = arith.constant 0 : i32
    return %arg0, %c0_i32 : i32, i32
  }
}

</mosaic_0001>

<bundles_post_ra>
// kernel: tpu_custom_call.1
= control target key start
LH: loop header
LB: loop body
LE: loop exit
PB: predicated region body
PF: predicated region fallthrough
CT: control target
= control target key end

     0   :  { %11 = vsyncpa [#allocation3], 0  ;;  %s1132_s0 = inlined_call_operand.vmem [shape: bf16[16,128], index: 0, kind: input, shape index: {}]   ;;  %s1133_s1 = inlined_call_operand.vmem [shape: f32[16,1], index: 1, kind: input, shape index: {}]   ;;  %s1134_s2 = inlined_call_operand.hbm [shape: bf16[128,128], index: 2, kind: input, shape index: {}]   ;;  %s1135_s3 = inlined_call_operand.vmem [shape: f32[1,128], index: 3, kind: input, shape index: {}]   ;;  %s1136_s4 = inlined_call_operand.hbm [shape: bf16[128,128], index: 4, kind: input, shape index: {}]   ;;  %s1137_s5 = inlined_call_operand.vmem [shape: f32[1,128], index: 5, kind: input, shape index: {}]   ;;  %s1138_s6 = inlined_call_operand.hbm [shape: f32[16,128], index: 6, kind: output, shape index: {}]  }
   0x1   :  { %12 = vsyncpa [#allocation6], 0 }
   0x2   :  { %13 = vsyncpa [#allocation4], 0 }
   0x3   :  { %15 = vsyncpa [#allocation4 + $0x1], 0  ;;  %s979_s21 = smov 0   ;;  %s981_s22 = smov 0  }
   0x4   :  { %s983_s23 = smov 0   ;;  %s985_s24 = smov 0  }
   0x5 LB: > { %s1000_s25 = sadd.s32 4294967295, %s934_s24   ;;  %s639_s26 = sadd.s32 4294967294, %s934_s24   ;;  %s934_s24 = sphi %s985_s24, %s1152_s24   ;;  %s930_s23 = sphi %s983_s23, %s1151_s23   ;;  %s926_s22 = sphi %s981_s22, %s1150_s22   ;;  %s922_s21 = sphi %s979_s21, %s1149_s21  }
   0x6   : > { %s1004_s27 = sadd.s32 1, %s934_s24   ;;  %s164_s28 = sadd.s32 1, %s930_s23 }
   0x7   : > { %s161_s29 = ssub.s32 %s934_s24, %s1004_s27  ;;  %p174_p0 = scmp.ne.s32.totalorder %s930_s23, %s926_s22 }
   0x8   : > { %p162_p1 = scmp.eq.s32.totalorder %s161_s29, 0  ;;  %p175_p2 = scmp.eq.s32.totalorder %s1000_s25, 1 }
   0x9   : > { %p180_p3 = scmp.ne.s32.totalorder %s926_s22, %s922_s21  ;;  %p181_p4 = scmp.eq.s32.totalorder %s639_s26, 1 }
   0xa   : > { %s1015_s30 = scalar_select %p162_p1, %s930_s23, %s164_s28  }
   0xb   : > { %p1017_p5 = por %p175_p2, %p174_p0  ;;  %p1021_p6 = por %p181_p4, %p180_p3 }
   0xc   : > { %p640_p7 = scmp.ge.s32.totalorder %s934_s24, 1  ;;  %p188_p8 = scmp.lt.s32.totalorder %s934_s24, 3 }
   0xd   : > { %s1141_s8 = scalar_select %p1021_p6, 1, 0 }
   0xe   : > { %p1139_p9 = scmp.eq.s32.totalorder %s1000_s25, 0  ;;  %p1028_p10 = pnand %p640_p7, %p188_p8 }
   0xf   : > { %s936_s10 = smov [#allocation2]   ;;  %s937_s13 = smov [#allocation5]  }
  0x10   : > { %s200_s11 = sshll.u32 %s936_s10, 4  ;;  %p740_p11 = pneg %p1028_p10  ;;  %s201_s11 = int_to_ptr.vmem [resolvable:$true] %s200_s11 }
  0x11   : > { %s216_s14 = sshll.u32 %s937_s13, 4  ;;  %s825_s15 = scalar_lea.vmem %s201_s11, 1024  ;;  %s217_s14 = int_to_ptr.vmem [resolvable:$true] %s216_s14 }
  0x12   : > { %p1036_p12 = pnand %p1139_p9, %p740_p11  ;;  %p826_p0 = scmp.ne.s32.totalorder %s201_s11, %s825_s15 }
  0x13   : > { %p833_p3 = scmp.lt.s32.totalorder %s201_s11, %s201_s11  ;;  %p834_p4 = scmp.lt.s32.totalorder %s825_s15, %s825_s15 }
  0x14   : > { %p816_p13 = pneg %p1036_p12 }
  0x15   : > { %p835_p7 = por %p834_p4, %p833_p3 }
  0x16   : > { %p828_p1 = pnand %p826_p0, %p816_p13 }
  0x18   : > { %p829_p2 = pneg %p828_p1 }
  0x1a   : > { %p836_p8 = pnand %p835_p7, %p829_p2 }
  0x1c   : > { %839 = shalt.err (!%p836_p8)
}
  0x1d   : > { %s938_s16 = smov 64   ;;  %s939_s17 = smov 4  }
  0x1e   : > { %743 = dma.hbm_to_vmem [thread:$0]  (!%p1036_p12), %s1134_s2, 1024, %s201_s11, [#allocation3], %s938_s16, %s938_s16, %s939_s17  }
  0x1f   : > { %s851_s20 = scalar_lea.vmem %s217_s14, 1024  ;;  %p859_p9 = scmp.lt.s32.totalorder %s217_s14, %s217_s14 }
  0x20   : > { %p852_p11 = scmp.ne.s32.totalorder %s217_s14, %s851_s20  ;;  %p860_p6 = scmp.lt.s32.totalorder %s851_s20, %s851_s20 }
  0x22   : > { %p854_p0 = pnand %p852_p11, %p816_p13  ;;  %p861_p3 = por %p860_p6, %p859_p9 }
  0x24   : > { %p855_p1 = pneg %p854_p0 }
  0x26   : > { %p862_p2 = pnand %p861_p3, %p855_p1 }
  0x28   : > { %865 = shalt.err (!%p862_p2)
}
  0x29   : > { %746 = dma.hbm_to_vmem [thread:$0]  (!%p1036_p12), %s1136_s4, 1024, %s217_s14, [#allocation6], %s938_s16, %s938_s16, %s939_s17  }
  0x2a   : > { %249 = sbr.rel (%p1028_p10) target bundleno = 511 (0x1ff), region = 44  ;;  %p1144_p4 = scmp.eq.s32.totalorder (!%p1028_p10), %s1000_s25, 0 }
  0x2f   : > { %909 = dma.done.wait (%p1144_p4), [#allocation3], 1024   ;;  %p1145_p13 = pmov %p1144_p4 }
  0x30   : > { %p1146_p7 = pmov %p1144_p4 }
  0x31   : > { %911 = vsyncadd (%p1145_p13), [#allocation3], 4294966272 }
  0x32   : > { %913 = dma.done.wait (%p1146_p7), [#allocation6], 1024   ;;  %p1147_p6 = pmov %p1144_p4 }
  0x33   : > { %v940_v0 = vmov 0.0   ;;  %vm941_vm0 = vmmov 0   ;;  %v942_v1 = vmov 0   ;;  %p286_p9 = scmp.lt.s32.totalorder %s1000_s25, 1  ;;  %v796_v2 = vld [vmem:[#allocation2 + $0x38] sm:$0xff]   ;;  %v797_v3 = vld [vmem:[#allocation2 + $0x30] sm:$0xff]  }
  0x34   : > { %915 = vsyncadd (%p1147_p6), [#allocation6], 4294966272  ;;  %690 = vmatprep.subr.bf16.mxu0 %v940_v0  ;;  %706 = vmatprep.mubr.msk.bf16.mxu0 %vm941_vm0, %v940_v0  ;;  %v798_v4 = vld [vmem:[#allocation2 + $0x28] sm:$0xff]   ;;  %v804_v7 = vld [vmem:[#allocation5 + $0x38] sm:$0xff]   ;;  %s283_s19 = sand.u32 1, %s926_s22  }
  0x35   : > { %795 = vset.pattern.permute.xlu0 %v942_v1  ;;  %710 = vmatprep.subr.bf16.mxu1 %v940_v0  ;;  %s1070_s29 = scalar_select %p286_p9, %s1000_s25, 1  ;;  %v799_v8 = vld [vmem:[#allocation2 + $0x20] sm:$0xff]   ;;  %v805_v10 = vld [vmem:[#allocation5 + $0x30] sm:$0xff]   ;;  %v800_v11 = vld [vmem:[#allocation2 + $0x18] sm:$0xff]  }
  0x36   : > { %726 = vmatprep.mubr.msk.bf16.mxu1 %vm941_vm0, %v940_v0  ;;  %691 = vmatpush3.bf16.msra.mxu0 %v796_v2  ;;  %v801_v12 = vld [vmem:[#allocation2 + $0x10] sm:$0xff]   ;;  %v802_v13 = vld [vmem:[#allocation2 + $0x8] sm:$0xff]   ;;  %v803_v14 = vld [vmem:[#allocation2] sm:$0xff]   ;;  %s647_s20 = sshll.u32 %s283_s19, 3  ;;  %s533_s14 = scalar_lea.sflag [#allocation4], %s283_s19 }
  0x37   : > { %s649_s9 = sshll.u32 %s1070_s29, 3  ;;  %692 = vmatprep.subr.bf16.mxu0 %v940_v0  ;;  %711 = vmatpush3.bf16.msra.mxu1 %v804_v7  ;;  %s648_s13 = sshll.u32 %s1070_s29, 2  ;;  %v806_v16 = vld [vmem:[#allocation5 + $0x28] sm:$0xff]   ;;  %v807_v17 = vld [vmem:[#allocation5 + $0x20] sm:$0xff]   ;;  %v808_v18 = vld [vmem:[#allocation5 + $0x18] sm:$0xff]  }
  0x38   : > { %s293_s12 = scalar_lea.vmem %s1133_s1, %s649_s9  ;;  %712 = vmatprep.subr.bf16.mxu1 %v940_v0  ;;  %s289_s16 = scalar_lea.vmem %s1132_s0, %s648_s13  ;;  %v809_v19 = vld [vmem:[#allocation5 + $0x10] sm:$0xff]   ;;  %v810_v20 = vld [vmem:[#allocation5 + $0x8] sm:$0xff]   ;;  %v811_v21 = vld [vmem:[#allocation5] sm:$0xff]  }
  0x39   : > { %v296_v5 = vld [vmem:[%s293_s12] sm:$0xff]  ;;  %s669_s29 = sshll.u32 %s1000_s25, 7  ;;  %s285_s9 = scalar_lea.vmem [#allocation7], %s647_s20 }
  0x3a   : > { %693 = vmatpush3.bf16.msra.mxu0 %v797_v3  ;;  %v297_v6 = vsub.f32 1.0, %v296_v5  ;;  %v295_v15 = vld [vmem:[%s289_s16] sm:$0xf]  ;;  %s546_s10 = sshll.u32 %s285_s9, 4  ;;  %s1091_s13 = scalar_lea.hbm %s1138_s6, %s669_s29  ;;  %s1093_s10 = int_to_ptr.vmem [resolvable:$true] %s546_s10 }
  0x3b   : > { %694 = vmatprep.subr.bf16.mxu0 %v940_v0  ;;  %713 = vmatpush3.bf16.msra.mxu1 %v805_v10  ;;  %v650_v22 = vld [vmem:[%s1135_s3] ss:$0 sm:$0xff]  ;;  %s866_s15 = scalar_lea.vmem %s1093_s10, 128  ;;  %s943_s25 = smov [#allocation7]  }
  0x3c   : > { %v298_v9 = vmul.f32 0.5, %v297_v6  ;;  %714 = vmatprep.subr.bf16.mxu1 %v940_v0  ;;  %v659_v34 = vld [vmem:[%s1137_s5] ss:$0 sm:$0xff]  ;;  %p867_p10 = scmp.ne.s32.totalorder %s1093_s10, %s866_s15  ;;  %s870_s16 = sshll.u32 %s943_s25, 4  ;;  %s871_s16 = int_to_ptr.vmem [resolvable:$false] %s870_s16 }
  0x3d   : > { %s872_s17 = scalar_lea.vmem %s871_s16, 256  ;;  %p873_p11 = scmp.lt.s32.totalorder %s1093_s10, %s871_s16 }
  0x3e   : > { %695 = vmatpush3.bf16.msra.mxu0 %v798_v4  ;;  %415 = vperm.xlu0 %795, %v298_v9   ;;  %p868_p12 = pnand %p867_p10, %p1017_p5  ;;  %p874_p0 = scmp.lt.s32.totalorder %s872_s17, %s866_s15 }
  0x3f   : > { %696 = vmatprep.subr.bf16.mxu0 %v940_v0  ;;  %715 = vmatpush3.bf16.msra.mxu1 %v806_v16 }
  0x40   : > { %716 = vmatprep.subr.bf16.mxu1 %v940_v0  ;;  %p869_p8 = pneg %p868_p12  ;;  %p875_p1 = por %p874_p0, %p873_p11 }
  0x42   : > { %697 = vmatpush3.bf16.msra.mxu0 %v799_v8  ;;  %p876_p3 = pnand %p875_p1, %p869_p8 }
  0x43   : > { %698 = vmatprep.subr.bf16.mxu0 %v940_v0  ;;  %717 = vmatpush3.bf16.msra.mxu1 %v807_v17 }
  0x44   : > { %718 = vmatprep.subr.bf16.mxu1 %v940_v0 }
  0x46   : > { %699 = vmatpush3.bf16.msra.mxu0 %v800_v11 }
  0x47   : > { %700 = vmatprep.subr.bf16.mxu0 %v940_v0  ;;  %719 = vmatpush3.bf16.msra.mxu1 %v808_v18 }
  0x48   : > { %720 = vmatprep.subr.bf16.mxu1 %v940_v0 }
  0x4a   : > { %701 = vmatpush3.bf16.msra.mxu0 %v801_v12 }
  0x4b   : > { %702 = vmatprep.subr.bf16.mxu0 %v940_v0  ;;  %721 = vmatpush3.bf16.msra.mxu1 %v809_v19 }
  0x4c   : > { %722 = vmatprep.subr.bf16.mxu1 %v940_v0 }
  0x4e   : > { %703 = vmatpush3.bf16.msra.mxu0 %v802_v13 }
  0x4f   : > { %704 = vmatprep.subr.bf16.mxu0 %v940_v0  ;;  %723 = vmatpush3.bf16.msra.mxu1 %v810_v20 }
  0x50   : > { %724 = vmatprep.subr.bf16.mxu1 %v940_v0 }
  0x52   : > { %705 = vmatpush3.bf16.msra.mxu0 %v803_v14 }
  0x53   : > { %725 = vmatpush3.bf16.msra.mxu1 %v811_v21 }
  0x55   : > { %707 = vmatmul.mubr.bf16.vlgmr.msra.gmra.mxu0 %v295_v15 }
  0xb9   : > { %v416_v30 = vpop.permute.xlu0 %415 }
 0x115   : > { %v404_v23 = vpop.f32.mrf.mxu0 }
 0x116   : > { %v405_v24 = vadd.f32 %v650_v22, %v404_v23 }
 0x117   : > { %v708_v25 = vpop.f32.mrf.mxu0 }
 0x118   : > { %v410_v26 = vmul.f32 0.5, %v405_v24 }
 0x119   : > { %v407_v27 = vpop.f32.mrf.mxu0 }
 0x11a   : > { %812 = vtanh.f32 %v410_v26 }
 0x11b   : > { %v709_v28 = vpop.f32.mrf.mxu0 }
 0x127   : > { %v813_v29 = vpop.eup %812 }
 0x128   : > { %v412_v31 = vadd.f32 1.0, %v813_v29 }
 0x12a   : > { %v418_v32 = vmul.f32 %v416_v30, %v412_v31 }
 0x12c   : > { %v419_v33 = vpack.c.bf16 %v418_v32, %v418_v32 }
 0x12e   : > { %727 = vmatmul.mubr.bf16.vlgmr.msra.gmra.mxu1 %v419_v33 }
 0x1ee   : > { %v525_v35 = vpop.f32.mrf.mxu1 }
 0x1ef   : > { %v526_v36 = vadd.f32 %v659_v34, %v525_v35 }
 0x1f0   : > { %v728_v37 = vpop.f32.mrf.mxu1 }
 0x1f1   : > { %531 = vst [vmem:[%s285_s9] sm:$0xff] %v526_v36 }
 0x1f2   : > { %v528_v38 = vpop.f32.mrf.mxu1 }
 0x1f3   : > { %879 = shalt.err (!%p876_p3)
}
 0x1f4   : > { %s880_s18 = scalar_lea.hbm %s1091_s13, 128  ;;  %s884_s26 = scalar_lea.hbm %s1138_s6, 256 }
 0x1f5   : > { %p881_p2 = scmp.ne.s32.totalorder %s1091_s13, %s880_s18  ;;  %p885_p7 = scmp.lt.s32.totalorder %s1091_s13, %s1138_s6 }
 0x1f6   : > { %p886_p6 = scmp.lt.s32.totalorder %s884_s26, %s880_s18 }
 0x1f7   : > { %p882_p4 = pnand %p881_p2, %p1017_p5 }
 0x1f8   : > { %p887_p9 = por %p886_p6, %p885_p7 }
 0x1f9   : > { %p883_p13 = pneg %p882_p4 }
 0x1fb   : > { %p888_p10 = pnand %p887_p9, %p883_p13 }
 0x1fd   : > { %891 = shalt.err (!%p888_p10)
}
 0x1fe   : > { %738 = dma.vmem_to_hbm [thread:$0]  (%p1017_p5), %s1093_s10, 128, %s1091_s13, %s533_s14   ;;  %v729_v39 = vpop.f32.mrf.mxu1 }
 0x1ff PF: > { %p755_p12 = scmp.ge.s32.totalorder %s934_s24, 2  ;;  %s558_s9 = sand.u32 1, %s922_s21  }
 0x200   : > { %p1148_p8 = scmp.ne.s32.totalorder %s1141_s8, 0  ;;  %s559_s11 = scalar_lea.sflag [#allocation4], %s558_s9 }
 0x202   : > { %p748_p11 = pnand %p755_p12, %p1148_p8 }
 0x204   : > { %p749_p0 = pneg %p748_p11 }
 0x206   : > { %917 = dma.done.wait (%p749_p0), %s559_s11, 128  }
 0x207   : > { %919 = vsyncadd (%p749_p0), %s559_s11, 4294967168  ;;  %p18_p1 = scmp.ge.s32.totalorder %s1004_s27, 4   ;;  %s1149_s21 = smov %s926_s22 }
 0x208   : > { %s1150_s22 = smov %s930_s23  ;;  %s1151_s23 = smov %s1015_s30 }
 0x209   : > { %s1152_s24 = smov %s1004_s27  ;;  %20 = sbr.rel (!%p18_p1) target bundleno = 5 (0x5), region = 91 }
 0x20e   :  { %564 = vsyncpa [#allocation3], 1 }
 0x20f   :  { %566 = vsyncpa [#allocation3 + $0x1], 1 }
 0x210   :  { %567 = vsyncpa [#allocation6], 1 }
 0x211   :  { %568 = vsyncpa [#allocation4], 1 }
 0x212   :  { %570 = vsyncpa [#allocation4 + $0x1], 1 }

// kernel: tpu_custom_call.1
= control target key start
LH: loop header
LB: loop body
LE: loop exit
PB: predicated region body
PF: predicated region fallthrough
CT: control target
= control target key end

     0   :  { %11 = vsyncpa [#allocation3], 0  ;;  %s1132_s0 = inlined_call_operand.vmem [shape: bf16[16,128], index: 0, kind: input, shape index: {}]   ;;  %s1133_s1 = inlined_call_operand.vmem [shape: f32[16,1], index: 1, kind: input, shape index: {}]   ;;  %s1134_s2 = inlined_call_operand.hbm [shape: bf16[128,128], index: 2, kind: input, shape index: {}]   ;;  %s1135_s3 = inlined_call_operand.vmem [shape: f32[1,128], index: 3, kind: input, shape index: {}]   ;;  %s1136_s4 = inlined_call_operand.hbm [shape: bf16[128,128], index: 4, kind: input, shape index: {}]   ;;  %s1137_s5 = inlined_call_operand.vmem [shape: f32[1,128], index: 5, kind: input, shape index: {}]   ;;  %s1138_s6 = inlined_call_operand.hbm [shape: f32[16,128], index: 6, kind: output, shape index: {}]  }
   0x1   :  { %12 = vsyncpa [#allocation6], 0 }
   0x2   :  { %13 = vsyncpa [#allocation4], 0 }
   0x3   :  { %15 = vsyncpa [#allocation4 + $0x1], 0  ;;  %s979_s21 = smov 0   ;;  %s981_s22 = smov 0  }
   0x4   :  { %s983_s23 = smov 0   ;;  %s985_s24 = smov 0  }
   0x5 LB: > { %s1000_s25 = sadd.s32 4294967295, %s934_s24   ;;  %s639_s26 = sadd.s32 4294967294, %s934_s24   ;;  %s934_s24 = sphi %s985_s24, %s1152_s24   ;;  %s930_s23 = sphi %s983_s23, %s1151_s23   ;;  %s926_s22 = sphi %s981_s22, %s1150_s22   ;;  %s922_s21 = sphi %s979_s21, %s1149_s21  }
   0x6   : > { %s1004_s27 = sadd.s32 1, %s934_s24   ;;  %s164_s28 = sadd.s32 1, %s930_s23 }
   0x7   : > { %s161_s29 = ssub.s32 %s934_s24, %s1004_s27  ;;  %p174_p0 = scmp.ne.s32.totalorder %s930_s23, %s926_s22 }
   0x8   : > { %p162_p1 = scmp.eq.s32.totalorder %s161_s29, 0  ;;  %p175_p2 = scmp.eq.s32.totalorder %s1000_s25, 1 }
   0x9   : > { %p180_p3 = scmp.ne.s32.totalorder %s926_s22, %s922_s21  ;;  %p181_p4 = scmp.eq.s32.totalorder %s639_s26, 1 }
   0xa   : > { %s1015_s30 = scalar_select %p162_p1, %s930_s23, %s164_s28  }
   0xb   : > { %p1017_p5 = por %p175_p2, %p174_p0  ;;  %p1021_p6 = por %p181_p4, %p180_p3 }
   0xc   : > { %p640_p7 = scmp.ge.s32.totalorder %s934_s24, 1  ;;  %p188_p8 = scmp.lt.s32.totalorder %s934_s24, 3 }
   0xd   : > { %s1141_s8 = scalar_select %p1021_p6, 1, 0 }
   0xe   : > { %p1139_p9 = scmp.eq.s32.totalorder %s1000_s25, 0  ;;  %p1028_p10 = pnand %p640_p7, %p188_p8 }
   0xf   : > { %s936_s10 = smov [#allocation2]   ;;  %s937_s13 = smov [#allocation5]  }
  0x10   : > { %s200_s11 = sshll.u32 %s936_s10, 4  ;;  %p740_p11 = pneg %p1028_p10  ;;  %s201_s11 = int_to_ptr.vmem [resolvable:$true] %s200_s11 }
  0x11   : > { %s216_s14 = sshll.u32 %s937_s13, 4  ;;  %s825_s15 = scalar_lea.vmem %s201_s11, 1024  ;;  %s217_s14 = int_to_ptr.vmem [resolvable:$true] %s216_s14 }
  0x12   : > { %p1036_p12 = pnand %p1139_p9, %p740_p11  ;;  %p826_p0 = scmp.ne.s32.totalorder %s201_s11, %s825_s15 }
  0x13   : > { %p833_p3 = scmp.lt.s32.totalorder %s201_s11, %s201_s11  ;;  %p834_p4 = scmp.lt.s32.totalorder %s825_s15, %s825_s15 }
  0x14   : > { %p816_p13 = pneg %p1036_p12 }
  0x15   : > { %p835_p7 = por %p834_p4, %p833_p3 }
  0x16   : > { %p828_p1 = pnand %p826_p0, %p816_p13 }
  0x18   : > { %p829_p2 = pneg %p828_p1 }
  0x1a   : > { %p836_p8 = pnand %p835_p7, %p829_p2 }
  0x1c   : > { %839 = shalt.err (!%p836_p8)
}
  0x1d   : > { %s938_s16 = smov 64   ;;  %s939_s17 = smov 4  }
  0x1e   : > { %743 = dma.hbm_to_vmem [thread:$0]  (!%p1036_p12), %s1134_s2, 1024, %s201_s11, [#allocation3], %s938_s16, %s938_s16, %s939_s17  }
  0x1f   : > { %s851_s20 = scalar_lea.vmem %s217_s14, 1024  ;;  %p859_p9 = scmp.lt.s32.totalorder %s217_s14, %s217_s14 }
  0x20   : > { %p852_p11 = scmp.ne.s32.totalorder %s217_s14, %s851_s20  ;;  %p860_p6 = scmp.lt.s32.totalorder %s851_s20, %s851_s20 }
  0x22   : > { %p854_p0 = pnand %p852_p11, %p816_p13  ;;  %p861_p3 = por %p860_p6, %p859_p9 }
  0x24   : > { %p855_p1 = pneg %p854_p0 }
  0x26   : > { %p862_p2 = pnand %p861_p3, %p855_p1 }
  0x28   : > { %865 = shalt.err (!%p862_p2)
}
  0x29   : > { %746 = dma.hbm_to_vmem [thread:$0]  (!%p1036_p12), %s1136_s4, 1024, %s217_s14, [#allocation6], %s938_s16, %s938_s16, %s939_s17  }
  0x2a   : > { %249 = sbr.rel (%p1028_p10) target bundleno = 511 (0x1ff), region = 44  ;;  %p1144_p4 = scmp.eq.s32.totalorder (!%p1028_p10), %s1000_s25, 0 }
  0x2f   : > { %909 = dma.done.wait (%p1144_p4), [#allocation3], 1024   ;;  %p1145_p13 = pmov %p1144_p4 }
  0x30   : > { %p1146_p7 = pmov %p1144_p4 }
  0x31   : > { %911 = vsyncadd (%p1145_p13), [#allocation3], 4294966272 }
  0x32   : > { %913 = dma.done.wait (%p1146_p7), [#allocation6], 1024   ;;  %p1147_p6 = pmov %p1144_p4 }
  0x33   : > { %v940_v0 = vmov 0.0   ;;  %vm941_vm0 = vmmov 0   ;;  %v942_v1 = vmov 0   ;;  %p286_p9 = scmp.lt.s32.totalorder %s1000_s25, 1  ;;  %v796_v2 = vld [vmem:[#allocation2 + $0x38] sm:$0xff]   ;;  %v797_v3 = vld [vmem:[#allocation2 + $0x30] sm:$0xff]  }
  0x34   : > { %915 = vsyncadd (%p1147_p6), [#allocation6], 4294966272  ;;  %690 = vmatprep.subr.bf16.mxu0 %v940_v0  ;;  %706 = vmatprep.mubr.msk.bf16.mxu0 %vm941_vm0, %v940_v0  ;;  %v798_v4 = vld [vmem:[#allocation2 + $0x28] sm:$0xff]   ;;  %v804_v7 = vld [vmem:[#allocation5 + $0x38] sm:$0xff]   ;;  %s283_s19 = sand.u32 1, %s926_s22  }
  0x35   : > { %795 = vset.pattern.permute.xlu0 %v942_v1  ;;  %710 = vmatprep.subr.bf16.mxu1 %v940_v0  ;;  %s1070_s29 = scalar_select %p286_p9, %s1000_s25, 1  ;;  %v799_v8 = vld [vmem:[#allocation2 + $0x20] sm:$0xff]   ;;  %v805_v10 = vld [vmem:[#allocation5 + $0x30] sm:$0xff]   ;;  %v800_v11 = vld [vmem:[#allocation2 + $0x18] sm:$0xff]  }
  0x36   : > { %726 = vmatprep.mubr.msk.bf16.mxu1 %vm941_vm0, %v940_v0  ;;  %691 = vmatpush3.bf16.msra.mxu0 %v796_v2  ;;  %v801_v12 = vld [vmem:[#allocation2 + $0x10] sm:$0xff]   ;;  %v802_v13 = vld [vmem:[#allocation2 + $0x8] sm:$0xff]   ;;  %v803_v14 = vld [vmem:[#allocation2] sm:$0xff]   ;;  %s647_s20 = sshll.u32 %s283_s19, 3  ;;  %s533_s14 = scalar_lea.sflag [#allocation4], %s283_s19 }
  0x37   : > { %s649_s9 = sshll.u32 %s1070_s29, 3  ;;  %692 = vmatprep.subr.bf16.mxu0 %v940_v0  ;;  %711 = vmatpush3.bf16.msra.mxu1 %v804_v7  ;;  %s648_s13 = sshll.u32 %s1070_s29, 2  ;;  %v806_v16 = vld [vmem:[#allocation5 + $0x28] sm:$0xff]   ;;  %v807_v17 = vld [vmem:[#allocation5 + $0x20] sm:$0xff]   ;;  %v808_v18 = vld [vmem:[#allocation5 + $0x18] sm:$0xff]  }
  0x38   : > { %s293_s12 = scalar_lea.vmem %s1133_s1, %s649_s9  ;;  %712 = vmatprep.subr.bf16.mxu1 %v940_v0  ;;  %s289_s16 = scalar_lea.vmem %s1132_s0, %s648_s13  ;;  %v809_v19 = vld [vmem:[#allocation5 + $0x10] sm:$0xff]   ;;  %v810_v20 = vld [vmem:[#allocation5 + $0x8] sm:$0xff]   ;;  %v811_v21 = vld [vmem:[#allocation5] sm:$0xff]  }
  0x39   : > { %v296_v5 = vld [vmem:[%s293_s12] sm:$0xff]  ;;  %s669_s29 = sshll.u32 %s1000_s25, 7  ;;  %s285_s9 = scalar_lea.vmem [#allocation7], %s647_s20 }
  0x3a   : > { %693 = vmatpush3.bf16.msra.mxu0 %v797_v3  ;;  %v297_v6 = vsub.f32 1.0, %v296_v5  ;;  %v295_v15 = vld [vmem:[%s289_s16] sm:$0xf]  ;;  %s546_s10 = sshll.u32 %s285_s9, 4  ;;  %s1091_s13 = scalar_lea.hbm %s1138_s6, %s669_s29  ;;  %s1093_s10 = int_to_ptr.vmem [resolvable:$true] %s546_s10 }
  0x3b   : > { %694 = vmatprep.subr.bf16.mxu0 %v940_v0  ;;  %713 = vmatpush3.bf16.msra.mxu1 %v805_v10  ;;  %v650_v22 = vld [vmem:[%s1135_s3] ss:$0 sm:$0xff]  ;;  %s866_s15 = scalar_lea.vmem %s1093_s10, 128  ;;  %s943_s25 = smov [#allocation7]  }
  0x3c   : > { %v298_v9 = vmul.f32 0.5, %v297_v6  ;;  %714 = vmatprep.subr.bf16.mxu1 %v940_v0  ;;  %v659_v34 = vld [vmem:[%s1137_s5] ss:$0 sm:$0xff]  ;;  %p867_p10 = scmp.ne.s32.totalorder %s1093_s10, %s866_s15  ;;  %s870_s16 = sshll.u32 %s943_s25, 4  ;;  %s871_s16 = int_to_ptr.vmem [resolvable:$false] %s870_s16 }
  0x3d   : > { %s872_s17 = scalar_lea.vmem %s871_s16, 256  ;;  %p873_p11 = scmp.lt.s32.totalorder %s1093_s10, %s871_s16 }
  0x3e   : > { %695 = vmatpush3.bf16.msra.mxu0 %v798_v4  ;;  %415 = vperm.xlu0 %795, %v298_v9   ;;  %p868_p12 = pnand %p867_p10, %p1017_p5  ;;  %p874_p0 = scmp.lt.s32.totalorder %s872_s17, %s866_s15 }
  0x3f   : > { %696 = vmatprep.subr.bf16.mxu0 %v940_v0  ;;  %715 = vmatpush3.bf16.msra.mxu1 %v806_v16 }
  0x40   : > { %716 = vmatprep.subr.bf16.mxu1 %v940_v0  ;;  %p869_p8 = pneg %p868_p12  ;;  %p875_p1 = por %p874_p0, %p873_p11 }
  0x42   : > { %697 = vmatpush3.bf16.msra.mxu0 %v799_v8  ;;  %p876_p3 = pnand %p875_p1, %p869_p8 }
  0x43   : > { %698 = vmatprep.subr.bf16.mxu0 %v940_v0  ;;  %717 = vmatpush3.bf16.msra.mxu1 %v807_v17 }
  0x44   : > { %718 = vmatprep.subr.bf16.mxu1 %v940_v0 }
  0x46   : > { %699 = vmatpush3.bf16.msra.mxu0 %v800_v11 }
  0x47   : > { %700 = vmatprep.subr.bf16.mxu0 %v940_v0  ;;  %719 = vmatpush3.bf16.msra.mxu1 %v808_v18 }
  0x48   : > { %720 = vmatprep.subr.bf16.mxu1 %v940_v0 }
  0x4a   : > { %701 = vmatpush3.bf16.msra.mxu0 %v801_v12 }
  0x4b   : > { %702 = vmatprep.subr.bf16.mxu0 %v940_v0  ;;  %721 = vmatpush3.bf16.msra.mxu1 %v809_v19 }
  0x4c   : > { %722 = vmatprep.subr.bf16.mxu1 %v940_v0 }
  0x4e   : > { %703 = vmatpush3.bf16.msra.mxu0 %v802_v13 }
  0x4f   : > { %704 = vmatprep.subr.bf16.mxu0 %v940_v0  ;;  %723 = vmatpush3.bf16.msra.mxu1 %v810_v20 }
  0x50   : > { %724 = vmatprep.subr.bf16.mxu1 %v940_v0 }
  0x52   : > { %705 = vmatpush3.bf16.msra.mxu0 %v803_v14 }
  0x53   : > { %725 = vmatpush3.bf16.msra.mxu1 %v811_v21 }
  0x55   : > { %707 = vmatmul.mubr.bf16.vlgmr.msra.gmra.mxu0 %v295_v15 }
  0xb9   : > { %v416_v30 = vpop.permute.xlu0 %415 }
 0x115   : > { %v404_v23 = vpop.f32.mrf.mxu0 }
 0x116   : > { %v405_v24 = vadd.f32 %v650_v22, %v404_v23 }
 0x117   : > { %v708_v25 = vpop.f32.mrf.mxu0 }
 0x118   : > { %v410_v26 = vmul.f32 0.5, %v405_v24 }
 0x119   : > { %v407_v27 = vpop.f32.mrf.mxu0 }
 0x11a   : > { %812 = vtanh.f32 %v410_v26 }
 0x11b   : > { %v709_v28 = vpop.f32.mrf.mxu0 }
 0x127   : > { %v813_v29 = vpop.eup %812 }
 0x128   : > { %v412_v31 = vadd.f32 1.0, %v813_v29 }
 0x12a   : > { %v418_v32 = vmul.f32 %v416_v30, %v412_v31 }
 0x12c   : > { %v419_v33 = vpack.c.bf16 %v418_v32, %v418_v32 }
 0x12e   : > { %727 = vmatmul.mubr.bf16.vlgmr.msra.gmra.mxu1 %v419_v33 }
 0x1ee   : > { %v525_v35 = vpop.f32.mrf.mxu1 }
 0x1ef   : > { %v526_v36 = vadd.f32 %v659_v34, %v525_v35 }
 0x1f0   : > { %v728_v37 = vpop.f32.mrf.mxu1 }
 0x1f1   : > { %531 = vst [vmem:[%s285_s9] sm:$0xff] %v526_v36 }
 0x1f2   : > { %v528_v38 = vpop.f32.mrf.mxu1 }
 0x1f3   : > { %879 = shalt.err (!%p876_p3)
}
 0x1f4   : > { %s880_s18 = scalar_lea.hbm %s1091_s13, 128  ;;  %s884_s26 = scalar_lea.hbm %s1138_s6, 256 }
 0x1f5   : > { %p881_p2 = scmp.ne.s32.totalorder %s1091_s13, %s880_s18  ;;  %p885_p7 = scmp.lt.s32.totalorder %s1091_s13, %s1138_s6 }
 0x1f6   : > { %p886_p6 = scmp.lt.s32.totalorder %s884_s26, %s880_s18 }
 0x1f7   : > { %p882_p4 = pnand %p881_p2, %p1017_p5 }
 0x1f8   : > { %p887_p9 = por %p886_p6, %p885_p7 }
 0x1f9   : > { %p883_p13 = pneg %p882_p4 }
 0x1fb   : > { %p888_p10 = pnand %p887_p9, %p883_p13 }
 0x1fd   : > { %891 = shalt.err (!%p888_p10)
}
 0x1fe   : > { %738 = dma.vmem_to_hbm [thread:$0]  (%p1017_p5), %s1093_s10, 128, %s1091_s13, %s533_s14   ;;  %v729_v39 = vpop.f32.mrf.mxu1 }
 0x1ff PF: > { %p755_p12 = scmp.ge.s32.totalorder %s934_s24, 2  ;;  %s558_s9 = sand.u32 1, %s922_s21  }
 0x200   : > { %p1148_p8 = scmp.ne.s32.totalorder %s1141_s8, 0  ;;  %s559_s11 = scalar_lea.sflag [#allocation4], %s558_s9 }
 0x202   : > { %p748_p11 = pnand %p755_p12, %p1148_p8 }
 0x204   : > { %p749_p0 = pneg %p748_p11 }
 0x206   : > { %917 = dma.done.wait (%p749_p0), %s559_s11, 128  }
 0x207   : > { %919 = vsyncadd (%p749_p0), %s559_s11, 4294967168  ;;  %p18_p1 = scmp.ge.s32.totalorder %s1004_s27, 4   ;;  %s1149_s21 = smov %s926_s22 }
 0x208   : > { %s1150_s22 = smov %s930_s23  ;;  %s1151_s23 = smov %s1015_s30 }
 0x209   : > { %s1152_s24 = smov %s1004_s27  ;;  %20 = sbr.rel (!%p18_p1) target bundleno = 5 (0x5), region = 91 }
 0x20e   :  { %564 = vsyncpa [#allocation3], 1 }
 0x20f   :  { %566 = vsyncpa [#allocation3 + $0x1], 1 }
 0x210   :  { %567 = vsyncpa [#allocation6], 1 }
 0x211   :  { %568 = vsyncpa [#allocation4], 1 }
 0x212   :  { %570 = vsyncpa [#allocation4 + $0x1], 1 }

</bundles_post_ra>
